<compile_context>
chip_gen: v7x
topology: tpu7x:2x2x1
jax: 0.10.0
libtpu: 0.0.40
codegen_flags: <defaults>
</compile_context>

<pallas_src>
import functools

import jax
import jax.numpy as jnp
from jax import lax
from jax.experimental import pallas as pl
from jax.experimental.pallas import tpu as pltpu


# ---------------------------------------------------------------------------
# Pass 1 kernel: per-channel sum / sum-of-squares accumulation + finalize.
# ---------------------------------------------------------------------------
def _stats_kernel(x_ref, gamma_ref, beta_ref, rmean_ref, rvar_ref,
                  scale_ref, shift_ref, new_rmean_ref, new_rvar_ref,
                  sum_sc, sumsq_sc,
                  *, eps, momentum, r_max, d_max, n_reduce):
    """x_ref: (1, C, tile_hw);  params / stats / outputs: (C, 1)."""
    n = pl.program_id(0)
    l = pl.program_id(1)

    @pl.when((n == 0) & (l == 0))
    def _init():
        sum_sc[...] = jnp.zeros_like(sum_sc)
        sumsq_sc[...] = jnp.zeros_like(sumsq_sc)

    x = x_ref[0].astype(jnp.float32)                         # (C, tile_hw)
    sum_sc[...] += jnp.sum(x, axis=1, keepdims=True)
    sumsq_sc[...] += jnp.sum(x * x, axis=1, keepdims=True)

    @pl.when((n == pl.num_programs(0) - 1) & (l == pl.num_programs(1) - 1))
    def _finalize():
        inv_n = 1.0 / n_reduce
        mean = sum_sc[...] * inv_n
        var_b = jnp.maximum(sumsq_sc[...] * inv_n - mean * mean, 0.0)
        var_u = var_b * (n_reduce / max(n_reduce - 1.0, 1.0))

        gamma = gamma_ref[...]
        beta = beta_ref[...]
        rm = rmean_ref[...]
        rv = rvar_ref[...]

        inv_run_std = lax.rsqrt(rv + eps)                    # EUP, (C,1)
        inv_std = lax.rsqrt(var_b + eps)
        r = jnp.clip(jnp.sqrt(var_b + eps) * inv_run_std, 1.0 / r_max, r_max)
        d = jnp.clip((mean - rm) * inv_run_std, -d_max, d_max)

        # Fused per-channel affine: y = x * scale + shift
        s = gamma * r * inv_std
        scale_ref[...] = s
        shift_ref[...] = gamma * d - mean * s + beta

        # Running-stat momentum updates (unbiased variance, as in the module).
        new_rmean_ref[...] = rm + momentum * (mean - rm)
        new_rvar_ref[...] = rv + momentum * (var_u - rv)


# ---------------------------------------------------------------------------
# Pass 2 kernel: streaming fused affine apply.
# ---------------------------------------------------------------------------
def _apply_kernel(x_ref, scale_ref, shift_ref, y_ref):
    """x_ref/y_ref: (1, C, tile_hw);  scale/shift: (C, 1)."""
    x = x_ref[0].astype(jnp.float32)
    y_ref[0] = (x * scale_ref[...] + shift_ref[...]).astype(y_ref.dtype)


# ---------------------------------------------------------------------------
# Tiling helper: largest multiple-of-128 divisor of HW under a byte budget.
# ---------------------------------------------------------------------------
def _choose_hw_tile(hw, c, itemsize, max_block_bytes=2 << 20):
    if hw % 128 != 0:
        # Only legal un-padded option is the full axis (block == full dim).
        return hw
    max_tile = max(128, (max_block_bytes // max(c * itemsize, 1)) // 128 * 128)
    best = 128
    for t in range(128, min(hw, max_tile) + 1, 128):
        if hw % t == 0:
            best = t
    return best


# ---------------------------------------------------------------------------
# Wrapper
# ---------------------------------------------------------------------------
def batch_renorm2d(x_nchw, gamma, beta, running_mean, running_var, *,
                   eps=1e-5, momentum=0.1, r_max=1.0, d_max=0.0,
                   training=True):
    """Pallas implementation of BatchRenormalization2D.forward.

    Returns:
      training=True : (y, new_running_mean(1,C,1,1), new_running_var(1,C,1,1))
      training=False: y
    """
    N, C, H, W = x_nchw.shape
    HW = H * W
    L = N * HW

    x3 = x_nchw.reshape(N, C, HW)                     # free reshape of NCHW
    g = gamma.reshape(C, 1).astype(jnp.float32)
    b = beta.reshape(C, 1).astype(jnp.float32)
    rm = running_mean.reshape(C, 1).astype(jnp.float32)
    rv = running_var.reshape(C, 1).astype(jnp.float32)

    tile_hw = _choose_hw_tile(HW, C, x3.dtype.itemsize)
    grid = (N, HW // tile_hw)

    x_spec = pl.BlockSpec((1, C, tile_hw), lambda n, l: (n, 0, l))
    par_spec = pl.BlockSpec((C, 1), lambda n, l: (0, 0))
    vmem_limit = 32 * 1024 * 1024                     # fits every generation

    if training:
        scale, shift, new_rm, new_rv = pl.pallas_call(
            functools.partial(
                _stats_kernel, eps=float(eps), momentum=float(momentum),
                r_max=float(r_max), d_max=float(d_max), n_reduce=float(L)),
            grid=grid,
            in_specs=[x_spec, par_spec, par_spec, par_spec, par_spec],
            out_specs=(par_spec, par_spec, par_spec, par_spec),
            out_shape=(jax.ShapeDtypeStruct((C, 1), jnp.float32),
                       jax.ShapeDtypeStruct((C, 1), jnp.float32),
                       jax.ShapeDtypeStruct((C, 1), jnp.float32),
                       jax.ShapeDtypeStruct((C, 1), jnp.float32)),
            scratch_shapes=[pltpu.VMEM((C, 1), jnp.float32),
                            pltpu.VMEM((C, 1), jnp.float32)],
            compiler_params=pltpu.CompilerParams(
                dimension_semantics=("arbitrary", "arbitrary"),
                vmem_limit_bytes=vmem_limit),
        )(x3, g, b, rm, rv)
    else:
        # Eval: per-channel affine from running stats (O(C), negligible).
        inv_std = lax.rsqrt(rv + float(eps))
        scale = g * inv_std
        shift = b - rm * scale

    y3 = pl.pallas_call(
        _apply_kernel,
        grid=grid,
        in_specs=[x_spec, par_spec, par_spec],
        out_specs=x_spec,
        out_shape=jax.ShapeDtypeStruct((N, C, HW), x3.dtype),
        compiler_params=pltpu.CompilerParams(
            dimension_semantics=("parallel", "parallel"),
            vmem_limit_bytes=vmem_limit),
    )(x3, scale, shift)

    y = y3.reshape(N, C, H, W)
    if training:
        # TODO(synk): num_tracked_batch counter and the r_max/d_max >5000-batch
        # increment schedule are host-side module state, not kernel math; with
        # the deterministic init here (num_tracked_batch=0) they are a no-op.
        return y, new_rm.reshape(1, C, 1, 1), new_rv.reshape(1, C, 1, 1)
    return y


# ---------------------------------------------------------------------------
# Pure-JAX reference (mirrors the PyTorch forward exactly)
# ---------------------------------------------------------------------------
def _ref_train(x, gamma, beta, rm, rv, eps, momentum, r_max, d_max):
    mean = jnp.mean(x, axis=(0, 2, 3), keepdims=True)
    var_b = jnp.var(x, axis=(0, 2, 3), keepdims=True)
    n = x.shape[0] * x.shape[2] * x.shape[3]
    var_u = var_b * n / (n - 1)
    r = jnp.clip(jnp.sqrt((var_b + eps) / (rv + eps)), 1.0 / r_max, r_max)
    d = jnp.clip((mean - rm) / jnp.sqrt(rv + eps), -d_max, d_max)
    y = gamma * ((x - mean) * r / jnp.sqrt(var_b + eps) + d) + beta
    return y, rm + momentum * (mean - rm), rv + momentum * (var_u - rv)


def _ref_eval(x, gamma, beta, rm, rv, eps):
    return gamma * ((x - rm) / jnp.sqrt(rv + eps)) + beta


# ---------------------------------------------------------------------------
# Main
# ---------------------------------------------------------------------------
if __name__ == "__main__":
    key = jax.random.PRNGKey(0)
    N, C, H, W = 2, 4, 16, 16
    x = jax.random.normal(key, (N, C, H, W), dtype=jnp.float32) * 2.0 + 0.5

    # Deterministic parameter / buffer init (matches the module __init__).
    gamma = jnp.ones((1, C, 1, 1), jnp.float32)
    beta = jnp.zeros((1, C, 1, 1), jnp.float32)
    running_mean = jnp.zeros((1, C, 1, 1), jnp.float32)
    running_var = jnp.ones((1, C, 1, 1), jnp.float32)
    eps, momentum, r_max, d_max = 1e-5, 0.1, 1.0, 0.0

    # Training-mode forward.
    y, new_rm, new_rv = batch_renorm2d(
        x, gamma, beta, running_mean, running_var,
        eps=eps, momentum=momentum, r_max=r_max, d_max=d_max, training=True)
    jax.block_until_ready((y, new_rm, new_rv))

    y_ref, rm_ref, rv_ref = _ref_train(
        x, gamma, beta, running_mean, running_var, eps, momentum, r_max, d_max)
    assert jnp.allclose(y, y_ref, atol=1e-4, rtol=1e-4), "train output mismatch"
    assert jnp.allclose(new_rm, rm_ref, atol=1e-5), "running mean mismatch"
    assert jnp.allclose(new_rv, rv_ref, atol=1e-5), "running var mismatch"

    # Eval-mode forward.
    y_eval = batch_renorm2d(
        x, gamma, beta, running_mean, running_var, eps=eps, training=False)
    jax.block_until_ready(y_eval)
    y_eval_ref = _ref_eval(x, gamma, beta, running_mean, running_var, eps)
    assert jnp.allclose(y_eval, y_eval_ref, atol=1e-4, rtol=1e-4), \
        "eval output mismatch"

    print("KERNEL_OK")
</pallas_src>

<mosaic_0001>
module attributes {stable_mosaic.version = 11 : i64} {
  func.func @_stats_kernel(%arg0: i32, %arg1: i32, %arg2: memref<1x4x256xf32, #tpu.memory_space<vmem>>, %arg3: memref<4x1xf32, #tpu.memory_space<vmem>>, %arg4: memref<4x1xf32, #tpu.memory_space<vmem>>, %arg5: memref<4x1xf32, #tpu.memory_space<vmem>>, %arg6: memref<4x1xf32, #tpu.memory_space<vmem>>, %arg7: memref<4x1xf32, #tpu.memory_space<vmem>>, %arg8: memref<4x1xf32, #tpu.memory_space<vmem>>, %arg9: memref<4x1xf32, #tpu.memory_space<vmem>>, %arg10: memref<4x1xf32, #tpu.memory_space<vmem>>, %arg11: memref<4x1xf32, #tpu.memory_space<vmem>>, %arg12: memref<4x1xf32, #tpu.memory_space<vmem>>) attributes {dimension_semantics = [#tpu.dimension_semantics<arbitrary>, #tpu.dimension_semantics<arbitrary>], iteration_bounds = array<i64: 2, 1>, scalar_prefetch = 0 : i64, scratch_operands = 2 : i64, tpu.core_type = #tpu.core_type<tc>, window_params = [{transform_indices = @transform_0, window_bounds = array<i64: 1, 4, 256>}, {pipeline_mode = #tpu.pipeline_mode<synchronous>, transform_indices = @transform_1, window_bounds = array<i64: 4, 1>}, {pipeline_mode = #tpu.pipeline_mode<synchronous>, transform_indices = @transform_2, window_bounds = array<i64: 4, 1>}, {pipeline_mode = #tpu.pipeline_mode<synchronous>, transform_indices = @transform_3, window_bounds = array<i64: 4, 1>}, {pipeline_mode = #tpu.pipeline_mode<synchronous>, transform_indices = @transform_4, window_bounds = array<i64: 4, 1>}, {pipeline_mode = #tpu.pipeline_mode<synchronous>, transform_indices = @transform_5, window_bounds = array<i64: 4, 1>}, {pipeline_mode = #tpu.pipeline_mode<synchronous>, transform_indices = @transform_6, window_bounds = array<i64: 4, 1>}, {pipeline_mode = #tpu.pipeline_mode<synchronous>, transform_indices = @transform_7, window_bounds = array<i64: 4, 1>}, {pipeline_mode = #tpu.pipeline_mode<synchronous>, transform_indices = @transform_8, window_bounds = array<i64: 4, 1>}]} {
    %c0_i32 = arith.constant 0 : i32
    %0 = arith.cmpi eq, %arg0, %c0_i32 : i32
    %c0_i32_0 = arith.constant 0 : i32
    %1 = arith.cmpi eq, %arg1, %c0_i32_0 : i32
    %2 = arith.andi %0, %1 : i1
    %3 = arith.extui %2 : i1 to i32
    %c0_i32_1 = arith.constant 0 : i32
    %4 = arith.cmpi ne, %3, %c0_i32_1 : i32
    scf.if %4 {
      %cst_15 = arith.constant 0.000000e+00 : f32
      %23 = vector.broadcast %cst_15 : f32 to vector<4x1xf32>
      %c0_16 = arith.constant 0 : index
      %c0_17 = arith.constant 0 : index
      %24 = vector.load %arg11[%c0_16, %c0_17] : memref<4x1xf32, #tpu.memory_space<vmem>>, vector<4x1xf32>
      tpu.vector_store %arg11[%c0_16, %c0_17], %23 {strides = array<i32>} : memref<4x1xf32, #tpu.memory_space<vmem>>, vector<4x1xf32>,
      %cst_18 = arith.constant 0.000000e+00 : f32
      %25 = vector.broadcast %cst_18 : f32 to vector<4x1xf32>
      %c0_19 = arith.constant 0 : index
      %c0_20 = arith.constant 0 : index
      %26 = vector.load %arg12[%c0_19, %c0_20] : memref<4x1xf32, #tpu.memory_space<vmem>>, vector<4x1xf32>
      tpu.vector_store %arg12[%c0_19, %c0_20], %25 {strides = array<i32>} : memref<4x1xf32, #tpu.memory_space<vmem>>, vector<4x1xf32>,
    } else {
    }
    %c0 = arith.constant 0 : index
    %c0_2 = arith.constant 0 : index
    %c0_3 = arith.constant 0 : index
    %5 = vector.load %arg2[%c0, %c0_2, %c0_3] : memref<1x4x256xf32, #tpu.memory_space<vmem>>, vector<1x4x256xf32>
    %6 = vector.shape_cast %5 : vector<1x4x256xf32> to vector<4x256xf32>
    %c0_4 = arith.constant 0 : index
    %c0_5 = arith.constant 0 : index
    %7 = vector.load %arg11[%c0_4, %c0_5] : memref<4x1xf32, #tpu.memory_space<vmem>>, vector<4x1xf32>
    %cst = arith.constant dense<0.000000e+00> : vector<4xf32>
    %8 = vector.multi_reduction <add>, %6, %cst [1] : vector<4x256xf32> to vector<4xf32>
    %9 = vector.shape_cast %8 : vector<4xf32> to vector<4x1xf32>
    %10 = arith.addf %7, %9 : vector<4x1xf32>
    %c0_6 = arith.constant 0 : index
    %c0_7 = arith.constant 0 : index
    %11 = vector.load %arg11[%c0_6, %c0_7] : memref<4x1xf32, #tpu.memory_space<vmem>>, vector<4x1xf32>
    tpu.vector_store %arg11[%c0_6, %c0_7], %10 {strides = array<i32>} : memref<4x1xf32, #tpu.memory_space<vmem>>, vector<4x1xf32>,
    %c0_8 = arith.constant 0 : index
    %c0_9 = arith.constant 0 : index
    %12 = vector.load %arg12[%c0_8, %c0_9] : memref<4x1xf32, #tpu.memory_space<vmem>>, vector<4x1xf32>
    %13 = arith.mulf %6, %6 : vector<4x256xf32>
    %cst_10 = arith.constant dense<0.000000e+00> : vector<4xf32>
    %14 = vector.multi_reduction <add>, %13, %cst_10 [1] : vector<4x256xf32> to vector<4xf32>
    %15 = vector.shape_cast %14 : vector<4xf32> to vector<4x1xf32>
    %16 = arith.addf %12, %15 : vector<4x1xf32>
    %c0_11 = arith.constant 0 : index
    %c0_12 = arith.constant 0 : index
    %17 = vector.load %arg12[%c0_11, %c0_12] : memref<4x1xf32, #tpu.memory_space<vmem>>, vector<4x1xf32>
    tpu.vector_store %arg12[%c0_11, %c0_12], %16 {strides = array<i32>} : memref<4x1xf32, #tpu.memory_space<vmem>>, vector<4x1xf32>,
    %c1_i32 = arith.constant 1 : i32
    %18 = arith.cmpi eq, %arg0, %c1_i32 : i32
    %c0_i32_13 = arith.constant 0 : i32
    %19 = arith.cmpi eq, %arg1, %c0_i32_13 : i32
    %20 = arith.andi %18, %19 : i1
    %21 = arith.extui %20 : i1 to i32
    %c0_i32_14 = arith.constant 0 : i32
    %22 = arith.cmpi ne, %21, %c0_i32_14 : i32
    scf.if %22 {
      %c0_15 = arith.constant 0 : index
      %c0_16 = arith.constant 0 : index
      %23 = vector.load %arg11[%c0_15, %c0_16] : memref<4x1xf32, #tpu.memory_space<vmem>>, vector<4x1xf32>
      %cst_17 = arith.constant 0.001953125 : f32
      %24 = vector.broadcast %cst_17 : f32 to vector<4x1xf32>
      %25 = arith.mulf %23, %24 : vector<4x1xf32>
      %c0_18 = arith.constant 0 : index
      %c0_19 = arith.constant 0 : index
      %26 = vector.load %arg12[%c0_18, %c0_19] : memref<4x1xf32, #tpu.memory_space<vmem>>, vector<4x1xf32>
      %cst_20 = arith.constant 0.001953125 : f32
      %27 = vector.broadcast %cst_20 : f32 to vector<4x1xf32>
      %28 = arith.mulf %26, %27 : vector<4x1xf32>
      %29 = arith.mulf %25, %25 : vector<4x1xf32>
      %30 = arith.subf %28, %29 : vector<4x1xf32>
      %cst_21 = arith.constant 0.000000e+00 : f32
      %31 = vector.broadcast %cst_21 : f32 to vector<4x1xf32>
      %32 = arith.maximumf %30, %31 : vector<4x1xf32>
      %cst_22 = arith.constant 1.00195694 : f32
      %33 = vector.broadcast %cst_22 : f32 to vector<4x1xf32>
      %34 = arith.mulf %32, %33 : vector<4x1xf32>
      %c0_23 = arith.constant 0 : index
      %c0_24 = arith.constant 0 : index
      %35 = vector.load %arg3[%c0_23, %c0_24] : memref<4x1xf32, #tpu.memory_space<vmem>>, vector<4x1xf32>
      %c0_25 = arith.constant 0 : index
      %c0_26 = arith.constant 0 : index
      %36 = vector.load %arg4[%c0_25, %c0_26] : memref<4x1xf32, #tpu.memory_space<vmem>>, vector<4x1xf32>
      %c0_27 = arith.constant 0 : index
      %c0_28 = arith.constant 0 : index
      %37 = vector.load %arg5[%c0_27, %c0_28] : memref<4x1xf32, #tpu.memory_space<vmem>>, vector<4x1xf32>
      %c0_29 = arith.constant 0 : index
      %c0_30 = arith.constant 0 : index
      %38 = vector.load %arg6[%c0_29, %c0_30] : memref<4x1xf32, #tpu.memory_space<vmem>>, vector<4x1xf32>
      %cst_31 = arith.constant 9.99999974E-6 : f32
      %39 = vector.broadcast %cst_31 : f32 to vector<4x1xf32>
      %40 = arith.addf %38, %39 : vector<4x1xf32>
      %41 = math.rsqrt %40 : vector<4x1xf32>
      %cst_32 = arith.constant 9.99999974E-6 : f32
      %42 = vector.broadcast %cst_32 : f32 to vector<4x1xf32>
      %43 = arith.addf %32, %42 : vector<4x1xf32>
      %44 = math.rsqrt %43 : vector<4x1xf32>
      %cst_33 = arith.constant 9.99999974E-6 : f32
      %45 = vector.broadcast %cst_33 : f32 to vector<4x1xf32>
      %46 = arith.addf %32, %45 : vector<4x1xf32>
      %47 = math.sqrt %46 : vector<4x1xf32>
      %48 = arith.mulf %47, %41 : vector<4x1xf32>
      %cst_34 = arith.constant 1.000000e+00 : f32
      %cst_35 = arith.constant 1.000000e+00 : f32
      %49 = vector.broadcast %cst_34 : f32 to vector<4x1xf32>
      %50 = arith.maximumf %49, %48 : vector<4x1xf32>
      %51 = vector.broadcast %cst_35 : f32 to vector<4x1xf32>
      %52 = arith.minimumf %51, %50 : vector<4x1xf32>
      %53 = arith.subf %25, %37 : vector<4x1xf32>
      %54 = arith.mulf %53, %41 : vector<4x1xf32>
      %cst_36 = arith.constant -0.000000e+00 : f32
      %cst_37 = arith.constant 0.000000e+00 : f32
      %55 = vector.broadcast %cst_36 : f32 to vector<4x1xf32>
      %56 = arith.maximumf %55, %54 : vector<4x1xf32>
      %57 = vector.broadcast %cst_37 : f32 to vector<4x1xf32>
      %58 = arith.minimumf %57, %56 : vector<4x1xf32>
      %59 = arith.mulf %35, %52 : vector<4x1xf32>
      %60 = arith.mulf %59, %44 : vector<4x1xf32>
      %c0_38 = arith.constant 0 : index
      %c0_39 = arith.constant 0 : index
      %61 = vector.load %arg7[%c0_38, %c0_39] : memref<4x1xf32, #tpu.memory_space<vmem>>, vector<4x1xf32>
      tpu.vector_store %arg7[%c0_38, %c0_39], %60 {strides = array<i32>} : memref<4x1xf32, #tpu.memory_space<vmem>>, vector<4x1xf32>,
      %62 = arith.mulf %35, %58 : vector<4x1xf32>
      %63 = arith.mulf %25, %60 : vector<4x1xf32>
      %64 = arith.subf %62, %63 : vector<4x1xf32>
      %65 = arith.addf %64, %36 : vector<4x1xf32>
      %c0_40 = arith.constant 0 : index
      %c0_41 = arith.constant 0 : index
      %66 = vector.load %arg8[%c0_40, %c0_41] : memref<4x1xf32, #tpu.memory_space<vmem>>, vector<4x1xf32>
      tpu.vector_store %arg8[%c0_40, %c0_41], %65 {strides = array<i32>} : memref<4x1xf32, #tpu.memory_space<vmem>>, vector<4x1xf32>,
      %67 = arith.subf %25, %37 : vector<4x1xf32>
      %cst_42 = arith.constant 1.000000e-01 : f32
      %68 = vector.broadcast %cst_42 : f32 to vector<4x1xf32>
      %69 = arith.mulf %68, %67 : vector<4x1xf32>
      %70 = arith.addf %37, %69 : vector<4x1xf32>
      %c0_43 = arith.constant 0 : index
      %c0_44 = arith.constant 0 : index
      %71 = vector.load %arg9[%c0_43, %c0_44] : memref<4x1xf32, #tpu.memory_space<vmem>>, vector<4x1xf32>
      tpu.vector_store %arg9[%c0_43, %c0_44], %70 {strides = array<i32>} : memref<4x1xf32, #tpu.memory_space<vmem>>, vector<4x1xf32>,
      %72 = arith.subf %34, %38 : vector<4x1xf32>
      %cst_45 = arith.constant 1.000000e-01 : f32
      %73 = vector.broadcast %cst_45 : f32 to vector<4x1xf32>
      %74 = arith.mulf %73, %72 : vector<4x1xf32>
      %75 = arith.addf %38, %74 : vector<4x1xf32>
      %c0_46 = arith.constant 0 : index
      %c0_47 = arith.constant 0 : index
      %76 = vector.load %arg10[%c0_46, %c0_47] : memref<4x1xf32, #tpu.memory_space<vmem>>, vector<4x1xf32>
      tpu.vector_store %arg10[%c0_46, %c0_47], %75 {strides = array<i32>} : memref<4x1xf32, #tpu.memory_space<vmem>>, vector<4x1xf32>,
    } else {
    }
    return
  }
  func.func @transform_0(%arg0: i32, %arg1: i32) -> (i32, i32, i32) {
    %c0_i32 = arith.constant 0 : i32
    %c0_i32_0 = arith.constant 0 : i32
    return %arg0, %c0_i32, %arg1 : i32, i32, i32
  }
  func.func @transform_1(%arg0: i32, %arg1: i32) -> (i32, i32) {
    %c0_i32 = arith.constant 0 : i32
    %c0_i32_0 = arith.constant 0 : i32
    %c0_i32_1 = arith.constant 0 : i32
    return %c0_i32, %c0_i32_0 : i32, i32
  }
  func.func @transform_2(%arg0: i32, %arg1: i32) -> (i32, i32) {
    %c0_i32 = arith.constant 0 : i32
    %c0_i32_0 = arith.constant 0 : i32
    %c0_i32_1 = arith.constant 0 : i32
    return %c0_i32, %c0_i32_0 : i32, i32
  }
  func.func @transform_3(%arg0: i32, %arg1: i32) -> (i32, i32) {
    %c0_i32 = arith.constant 0 : i32
    %c0_i32_0 = arith.constant 0 : i32
    %c0_i32_1 = arith.constant 0 : i32
    return %c0_i32, %c0_i32_0 : i32, i32
  }
  func.func @transform_4(%arg0: i32, %arg1: i32) -> (i32, i32) {
    %c0_i32 = arith.constant 0 : i32
    %c0_i32_0 = arith.constant 0 : i32
    %c0_i32_1 = arith.constant 0 : i32
    return %c0_i32, %c0_i32_0 : i32, i32
  }
  func.func @transform_5(%arg0: i32, %arg1: i32) -> (i32, i32) {
    %c0_i32 = arith.constant 0 : i32
    %c0_i32_0 = arith.constant 0 : i32
    %c0_i32_1 = arith.constant 0 : i32
    return %c0_i32, %c0_i32_0 : i32, i32
  }
  func.func @transform_6(%arg0: i32, %arg1: i32) -> (i32, i32) {
    %c0_i32 = arith.constant 0 : i32
    %c0_i32_0 = arith.constant 0 : i32
    %c0_i32_1 = arith.constant 0 : i32
    return %c0_i32, %c0_i32_0 : i32, i32
  }
  func.func @transform_7(%arg0: i32, %arg1: i32) -> (i32, i32) {
    %c0_i32 = arith.constant 0 : i32
    %c0_i32_0 = arith.constant 0 : i32
    %c0_i32_1 = arith.constant 0 : i32
    return %c0_i32, %c0_i32_0 : i32, i32
  }
  func.func @transform_8(%arg0: i32, %arg1: i32) -> (i32, i32) {
    %c0_i32 = arith.constant 0 : i32
    %c0_i32_0 = arith.constant 0 : i32
    %c0_i32_1 = arith.constant 0 : i32
    return %c0_i32, %c0_i32_0 : i32, i32
  }
}

</mosaic_0001>

<bundles_post_ra>
// kernel: tpu_custom_call.1
= control target key start
LH: loop header
LB: loop body
LE: loop exit
PB: predicated region body
PF: predicated region fallthrough
CT: control target
= control target key end

     0   :  { %s570_s27 = smov 0   ;;  %s572_s28 = smov 0   ;;  %s636_s0 = inlined_call_operand.vmem [shape: f32[2,4,256], index: 0, kind: input, shape index: {}]   ;;  %s637_s1 = inlined_call_operand.vmem [shape: f32[4,1], index: 1, kind: input, shape index: {}]   ;;  %s638_s2 = inlined_call_operand.vmem [shape: f32[4,1], index: 2, kind: input, shape index: {}]   ;;  %s639_s3 = inlined_call_operand.vmem [shape: f32[4,1], index: 3, kind: input, shape index: {}]   ;;  %s640_s4 = inlined_call_operand.vmem [shape: f32[4,1], index: 4, kind: input, shape index: {}]   ;;  %s641_s5 = inlined_call_operand.vmem [shape: f32[4,1], index: 5, kind: output, shape index: {0}]   ;;  %s642_s6 = inlined_call_operand.vmem [shape: f32[4,1], index: 6, kind: output, shape index: {1}]   ;;  %s643_s7 = inlined_call_operand.vmem [shape: f32[4,1], index: 7, kind: output, shape index: {2}]   ;;  %s644_s8 = inlined_call_operand.vmem [shape: f32[4,1], index: 8, kind: output, shape index: {3}]  }
   0x1   :  { %s574_s29 = smov 0  }
   0x2 LB: > { %s31_s30 = sadd.s32 1, %s518_s28  ;;  %p459_p0 = scmp.ge.s32.totalorder %s522_s29, 1  ;;  %s522_s29 = sphi %s574_s29, %s19_s29   ;;  %s518_s28 = sphi %s572_s28, %s646_s28   ;;  %s514_s27 = sphi %s570_s27, %s645_s27  }
   0x3   : > { %p33_p1 = scmp.ge.s32.totalorder %s31_s30, 2  ;;  %p268_p2 = scmp.lt.s32.totalorder %s522_s29, 3 }
   0x5   : > { %s648_s30 = smov (%p33_p1, %s31_s30), 0  ;;  %p269_p3 = pnand %p459_p0, %p268_p2 }
   0x6   : > { %p302_p4 = scmp.lt.s32.totalorder (!%p269_p3), %s514_s27, 1  ;;  %p311_p5 = scmp.eq.s32.totalorder (!%p269_p3), %s514_s27, 0 }
   0x7   : > { %272 = sbr.rel (%p269_p3) target bundleno = 224 (0xe0), region = 40 }
   0xe   : > { %s303_s9 = scalar_select %p302_p4, %s514_s27, 1 }
   0xf   : > { %316 = sbr.rel (!%p311_p5) target bundleno = 22 (0x16), region = 44  ;;  %vm317_vm0 = vcmask (%p311_p5), 3072   ;;  %v524_v0 = vmov (%p311_p5), 0.0  }
  0x10   : > { %s467_s10 = sshll.u32 %s303_s9, 3  ;;  %318 = vst.msk [vmem:[#allocation2] sm:$0xf] (%p311_p5), %vm317_vm0, %v524_v0  ;;  %319 = vst.msk [vmem:[#allocation3] sm:$0xf] (%p311_p5), %vm317_vm0, %v524_v0 }
  0x11   : > { %s309_s13 = scalar_lea.vmem %s636_s0, %s467_s10 }
  0x16 PF: > { %v320_v1 = vld [vmem:[%s309_s13] sm:$0xff]  ;;  %vm325_vm1 = vcmask 1043456   ;;  %p346_p6 = scmp.eq.s32.totalorder %s514_s27, 1  ;;  %vm332_vm2 = vcmask 3072  }
  0x17   : > { %v323_v2 = vcombine.high %v320_v1, %v320_v1  ;;  %v326_v3 = vsel %vm325_vm1, %v320_v1, 0.0  ;;  %v335_v4 = vmul.f32 %v320_v1, %v320_v1  ;;  %v321_v11 = vld [vmem:[#allocation2] sm:$0xf]  ;;  %v334_v14 = vld [vmem:[#allocation3] sm:$0xf] }
  0x18   : > { %v361_v21 = vld [vmem:[%s639_s3] sm:$0xf] (%p346_p6) }
  0x19   : > { %v327_v5 = vsel %vm325_vm1, %v323_v2, 0.0  ;;  %v337_v6 = vcombine.high %v335_v4, %v335_v4  ;;  %v339_v7 = vsel %vm325_vm1, %v335_v4, 0.0  ;;  %v362_v26 = vld [vmem:[%s640_s4] sm:$0xf] (%p346_p6) }
  0x1a   : > { %v328_v8 = vadd.f32 %v327_v5, %v326_v3  ;;  %v363_v29 = vadd.f32 (%p346_p6), 1e-05, %v362_v26  ;;  %v359_v44 = vld [vmem:[%s637_s1] sm:$0xf] (%p346_p6) }
  0x1b   : > { %v340_v9 = vsel %vm325_vm1, %v337_v6, 0.0  ;;  %v360_v51 = vld [vmem:[%s638_s2] sm:$0xf] (%p346_p6) }
  0x1c   : > { %329 = vadd.xlane.f32.xlu0 %v328_v8  ;;  %v341_v10 = vadd.f32 %v340_v9, %v339_v7 }
  0x20   : > { %342 = vadd.xlane.f32.xlu0 %v341_v10 }
  0xa9   : > { %v330_v12 = vpop.xlane.xlu0 %329 }
  0xaa   : > { %v331_v13 = vadd.f32 %v330_v12, %v321_v11  ;;  %350 = sbr.rel (!%p346_p6) target bundleno = 224 (0xe0), region = 48 }
  0xac   : > { %333 = vst.msk [vmem:[#allocation2] sm:$0xf] %vm332_vm2, %v331_v13 }
  0xad   : > { %v343_v15 = vpop.xlane.xlu0 %342 }
  0xae   : > { %v344_v16 = vadd.f32 %v343_v15, %v334_v14 }
  0xb0   : > { %345 = vst.msk [vmem:[#allocation3] sm:$0xf] %vm332_vm2, %v344_v16 }
  0xb3   : > { %v351_v17 = vld [vmem:[#allocation2] sm:$0xf] }
  0xb4   : > { %v352_v19 = vmul.f32 0.001953125, %v351_v17 }
  0xb6   : > { %v355_v22 = vmul.f32 %v352_v19, %v352_v19  ;;  %v377_v23 = vsub.f32 %v352_v19, %v361_v21 }
  0xb7   : > { %v353_v18 = vld [vmem:[#allocation3] sm:$0xf] }
  0xb8   : > { %v354_v20 = vmul.f32 0.001953125, %v353_v18  ;;  %v389_v25 = vmul.f32 0.1, %v377_v23 }
  0xba   : > { %v356_v24 = vsub.f32 %v354_v20, %v355_v22  ;;  %v390_v28 = vadd.f32 %v389_v25, %v361_v21 }
  0xbc   : > { %v357_v27 = vmax.f32 %v356_v24, 0.0  ;;  %391 = vst.msk [vmem:[%s643_s7] sm:$0xf] %vm332_vm2, %v390_v28 }
  0xbe   : > { %v365_v30 = vadd.f32 1e-05, %v357_v27  ;;  %v358_v31 = vmul.f32 1.0019569, %v357_v27 }
  0xc0   : > { %496 = vrsqrt.f32 %v365_v30  ;;  %v392_v32 = vsub.f32 %v358_v31, %v362_v26  ;;  %vm369_vm3 = vcmp.eq.f32.partialorder %v365_v30, inf  ;;  %v372_v36 = vand.u32 2147483648, %v365_v30 }
  0xc1   : > { %498 = vrsqrt.f32 %v363_v29  ;;  %vm371_vm4 = vcmp.eq.f32.partialorder %v365_v30, 0.0 }
  0xc2   : > { %v393_v33 = vmul.f32 0.1, %v392_v32 }
  0xc4   : > { %v394_v34 = vadd.f32 %v393_v33, %v362_v26 }
  0xc6   : > { %395 = vst.msk [vmem:[%s644_s8] sm:$0xf] %vm332_vm2, %v394_v34 }
  0xca   : > { %v497_v35 = vpop.eup %496 }
  0xcb   : > { %v368_v37 = vmul.f32 %v497_v35, %v365_v30  ;;  %v499_v38 = vpop.eup %498 }
  0xcc   : > { %v378_v42 = vmul.f32 %v499_v38, %v377_v23 }
  0xcd   : > { %v370_v39 = vsel %vm369_vm3, %v365_v30, %v368_v37 }
  0xce   : > { %v373_v40 = vsel %vm371_vm4, %v372_v36, %v370_v39  ;;  %v464_v46 = vclamps-f32 %v378_v42, 0.0 }
  0xcf   : > { %v374_v41 = vmul.f32 %v499_v38, %v373_v40 }
  0xd0   : > { %v384_v49 = vmul.f32 %v464_v46, %v359_v44 }
  0xd1   : > { %v375_v43 = vmax.f32 %v374_v41, 1.0 }
  0xd3   : > { %v376_v45 = vmin.f32 %v375_v43, 1.0 }
  0xd5   : > { %v381_v47 = vmul.f32 %v376_v45, %v359_v44 }
  0xd7   : > { %v382_v48 = vmul.f32 %v497_v35, %v381_v47 }
  0xd9   : > { %383 = vst.msk [vmem:[%s641_s5] sm:$0xf] %vm332_vm2, %v382_v48  ;;  %v385_v50 = vmul.f32 %v382_v48, %v352_v19 }
  0xdb   : > { %v386_v52 = vsub.f32 %v384_v49, %v385_v50 }
  0xdd   : > { %v387_v53 = vadd.f32 %v386_v52, %v360_v51 }
  0xdf   : > { %388 = vst.msk [vmem:[%s642_s6] sm:$0xf] %vm332_vm2, %v387_v53 }
  0xe0 PF: > { %s19_s29 = sadd.s32 1, %s522_s29   ;;  %s645_s27 = smov %s518_s28 }
  0xe1   : > { %p16_p7 = scmp.ge.s32.totalorder %s19_s29, 4   ;;  %s646_s28 = smov %s648_s30 }
  0xe3   :  { %18 = sbr.rel (!%p16_p7) target bundleno = 2 (0x2), region = 98 }

</bundles_post_ra>
